<compile_context>
chip_gen: v7x
topology: tpu7x:2x2x1
jax: 0.10.0
libtpu: 0.0.40
codegen_flags: <defaults>
</compile_context>

<pallas_src>
import math
import jax
import jax.numpy as jnp
from jax.experimental import pallas as pl
from jax.experimental.pallas import tpu as pltpu


def quality_kernel(xflat_ref, xcls_ref, mask_ref,
                   wq_ref, wk_ref, wv_ref, wo_ref, w1_ref, w2_ref,
                   wfc_ref, bfc_ref, o_ref):
    # xflat_ref: (TB*S, H) bf16  flattened token embeddings (wrapper-side flatten)
    # xcls_ref : (TB, H)   bf16  CLS-row embeddings
    # mask_ref : (TB, S)   f32   attention mask (1.0 = keep, 0.0 = pad)
    # o_ref    : (TB, LP)  f32   softmax class probabilities (LP = padded label dim)
    x_flat = xflat_ref[...]                       # (TB*S, H) bf16
    x_cls16 = xcls_ref[...]                       # (TB, H) bf16
    mask = mask_ref[...]                          # (TB, S) f32
    TB, S = mask.shape
    H = x_cls16.shape[-1]

    # --- projections: bf16 MXU matmuls with f32 accumulation ---
    k = jnp.dot(x_flat, wk_ref[...], preferred_element_type=jnp.float32)    # (TB*S, H)
    v = jnp.dot(x_flat, wv_ref[...], preferred_element_type=jnp.float32)    # (TB*S, H)
    q = jnp.dot(x_cls16, wq_ref[...], preferred_element_type=jnp.float32)   # (TB, H) CLS-only

    k3 = k.reshape(TB, S, H)                      # S == sublane tile (8): tile-aligned split
    v3 = v.reshape(TB, S, H)

    # --- CLS-only attention: scores (TB, S) via elementwise mul + lane reduce ---
    scores = jnp.sum(q[:, None, :] * k3, axis=-1)                            # (TB, S) f32
    scores = scores * (1.0 / math.sqrt(H)) + (mask - 1.0) * 1e9

    s_max = jnp.max(scores, axis=-1, keepdims=True)
    p = jnp.exp(scores - s_max)                                              # (TB, S)
    attn = p * pl.reciprocal(jnp.sum(p, axis=-1, keepdims=True), approx=True)

    # context for the CLS row only: (TB, S, 1) * (TB, S, H) reduced over S (sublane reduce)
    ctx_cls = jnp.sum(attn[:, :, None] * v3, axis=1)                         # (TB, H) f32

    # --- output projection, residual, FFN — all restricted to the TB CLS rows ---
    attn_out = jnp.dot(ctx_cls.astype(jnp.bfloat16), wo_ref[...],
                       preferred_element_type=jnp.float32)                   # (TB, H)
    h = x_cls16.astype(jnp.float32) + attn_out                               # residual

    ff = jnp.maximum(jnp.dot(h.astype(jnp.bfloat16), w1_ref[...],
                             preferred_element_type=jnp.float32), 0.0)
    ff = jnp.dot(ff.astype(jnp.bfloat16), w2_ref[...],
                 preferred_element_type=jnp.float32)
    feat = h + ff                                                            # CLS hidden state

    # --- dropout (eval: identity) -> fc -> softmax over padded label lanes ---
    logits = jnp.dot(feat.astype(jnp.bfloat16), wfc_ref[...],
                     preferred_element_type=jnp.float32) + bfc_ref[...]      # (TB, LP)
    l_max = jnp.max(logits, axis=-1, keepdims=True)
    e = jnp.exp(logits - l_max)                   # padded lanes: exp(-1e9 - max) -> 0
    probs = e * pl.reciprocal(jnp.sum(e, axis=-1, keepdims=True), approx=False)  # exact

    o_ref[...] = probs                            # dense lane-aligned (TB, LP) store


def quality_model_forward(input_ids, attention_mask, params, block_b=None):
    """input_ids: (B, S) int32, attention_mask: (B, S). Returns (B, L) f32 probabilities."""
    emb_table = params["emb_table"]               # (V, H) f32
    B, S = input_ids.shape
    H = emb_table.shape[-1]
    L = params["wfc"].shape[-1]
    F = params["w1"].shape[-1]
    LP = max(128, ((L + 127) // 128) * 128)       # lane-dense padded label dim

    if block_b is None:
        # Single program for small B (v5e/v6e have one TensorCore: extra grid steps are pure
        # overhead).  For large B use 32-example blocks so TB*S fills a 256-row MXU pass.
        # TODO(synk): on v7x choose block_b = cdiv(B, 2) rounded up to 8 for its two TCs.
        block_b = B if B <= 32 else 32
    nb = pl.cdiv(B, block_b)
    b_pad = nb * block_b

    # glue (not hot path): pad batch, embedding gather, flatten, CLS slab, mask, padded head
    ids = jnp.pad(input_ids, ((0, b_pad - B), (0, 0)))
    msk = jnp.pad(attention_mask.astype(jnp.float32), ((0, b_pad - B), (0, 0)),
                  constant_values=1.0)
    emb = emb_table[ids].astype(jnp.bfloat16)     # (b_pad, S, H) bf16 — halves streaming DMA
    x_flat = emb.reshape(b_pad * S, H)            # wrapper-side flatten (free vs kernel)
    x_cls = emb[:, 0, :]                          # (b_pad, H) CLS rows

    wfc_p = jnp.pad(params["wfc"], ((0, 0), (0, LP - L)))                    # zero columns
    bfc_p = jnp.pad(params["bfc"], ((0, 0), (0, LP - L)), constant_values=-1e9)

    full = lambda shape: pl.BlockSpec(shape, lambda b: (0,) * len(shape))

    out = pl.pallas_call(
        quality_kernel,
        out_shape=jax.ShapeDtypeStruct((b_pad, LP), jnp.float32),
        grid_spec=pltpu.PrefetchScalarGridSpec(
            num_scalar_prefetch=0,
            grid=(nb,),
            in_specs=[
                pl.BlockSpec((block_b * S, H), lambda b: (b, 0)),  # flattened embeddings
                pl.BlockSpec((block_b, H), lambda b: (b, 0)),      # CLS-row embeddings
                pl.BlockSpec((block_b, S), lambda b: (b, 0)),      # attention mask
                full((H, H)),   # wq (bf16)
                full((H, H)),   # wk (bf16)
                full((H, H)),   # wv (bf16)
                full((H, H)),   # wo (bf16)
                full((H, F)),   # w1 (bf16)
                full((F, H)),   # w2 (bf16)
                full((H, LP)),  # wfc padded (bf16)
                full((1, LP)),  # bfc padded (f32, pads = -1e9)
            ],
            out_specs=pl.BlockSpec((block_b, LP), lambda b: (b, 0)),
        ),
        compiler_params=pltpu.CompilerParams(dimension_semantics=("parallel",)),
    )(x_flat, x_cls, msk, params["wq"], params["wk"], params["wv"],
      params["wo"], params["w1"], params["w2"], wfc_p, bfc_p)

    return out[:B, :L]


def init_params(key, vocab=64, hidden=32, ffn=128, num_labels=3):
    ks = jax.random.split(key, 9)
    s = 1.0 / math.sqrt(hidden)
    return {
        "emb_table": jax.random.normal(ks[0], (vocab, hidden), jnp.float32) * 0.02,
        "wq": (jax.random.normal(ks[1], (hidden, hidden), jnp.float32) * s).astype(jnp.bfloat16),
        "wk": (jax.random.normal(ks[2], (hidden, hidden), jnp.float32) * s).astype(jnp.bfloat16),
        "wv": (jax.random.normal(ks[3], (hidden, hidden), jnp.float32) * s).astype(jnp.bfloat16),
        "wo": (jax.random.normal(ks[4], (hidden, hidden), jnp.float32) * s).astype(jnp.bfloat16),
        "w1": (jax.random.normal(ks[5], (hidden, ffn), jnp.float32) * s).astype(jnp.bfloat16),
        "w2": (jax.random.normal(ks[6], (ffn, hidden), jnp.float32)
               * (1.0 / math.sqrt(ffn))).astype(jnp.bfloat16),
        "wfc": (jax.random.normal(ks[7], (hidden, num_labels), jnp.float32) * s).astype(jnp.bfloat16),
        "bfc": jax.random.normal(ks[8], (1, num_labels), jnp.float32) * 0.01,
    }


if __name__ == "__main__":
    B, S, H, L, V = 8, 8, 32, 3, 64
    key = jax.random.PRNGKey(0)
    k_ids, k_par = jax.random.split(key)

    input_ids = jax.random.randint(k_ids, (B, S), 0, V, dtype=jnp.int32)
    attention_mask = jnp.ones((B, S), jnp.float32)
    attention_mask = attention_mask.at[1, 6:].set(0.0).at[5, 4:].set(0.0)   # pad some tails
    params = init_params(k_par, vocab=V, hidden=H, ffn=4 * H, num_labels=L)

    probs = quality_model_forward(input_ids, attention_mask, params)
    probs = jax.block_until_ready(probs)

    assert probs.shape == (B, L)
    assert bool(jnp.all(jnp.isfinite(probs)))
    assert bool(jnp.allclose(jnp.sum(probs, axis=-1), 1.0, atol=1e-5))
    print("KERNEL_OK")
</pallas_src>

<mosaic_0001>
module attributes {stable_mosaic.version = 11 : i64} {
  func.func @quality_kernel(%arg0: i32, %arg1: memref<64x32xbf16, #tpu.memory_space<vmem>>, %arg2: memref<8x32xbf16, #tpu.memory_space<vmem>>, %arg3: memref<8x8xf32, #tpu.memory_space<vmem>>, %arg4: memref<32x32xbf16, #tpu.memory_space<vmem>>, %arg5: memref<32x32xbf16, #tpu.memory_space<vmem>>, %arg6: memref<32x32xbf16, #tpu.memory_space<vmem>>, %arg7: memref<32x32xbf16, #tpu.memory_space<vmem>>, %arg8: memref<32x128xbf16, #tpu.memory_space<vmem>>, %arg9: memref<128x32xbf16, #tpu.memory_space<vmem>>, %arg10: memref<32x128xbf16, #tpu.memory_space<vmem>>, %arg11: memref<1x128xf32, #tpu.memory_space<vmem>>, %arg12: memref<8x128xf32, #tpu.memory_space<vmem>>) attributes {dimension_semantics = [#tpu.dimension_semantics<parallel>], iteration_bounds = array<i64: 1>, scalar_prefetch = 0 : i64, scratch_operands = 0 : i64, tpu.core_type = #tpu.core_type<tc>, window_params = [{transform_indices = @transform_0, window_bounds = array<i64: 64, 32>}, {transform_indices = @transform_1, window_bounds = array<i64: 8, 32>}, {transform_indices = @transform_2, window_bounds = array<i64: 8, 8>}, {pipeline_mode = #tpu.pipeline_mode<synchronous>, transform_indices = @transform_3, window_bounds = array<i64: 32, 32>}, {pipeline_mode = #tpu.pipeline_mode<synchronous>, transform_indices = @transform_4, window_bounds = array<i64: 32, 32>}, {pipeline_mode = #tpu.pipeline_mode<synchronous>, transform_indices = @transform_5, window_bounds = array<i64: 32, 32>}, {pipeline_mode = #tpu.pipeline_mode<synchronous>, transform_indices = @transform_6, window_bounds = array<i64: 32, 32>}, {pipeline_mode = #tpu.pipeline_mode<synchronous>, transform_indices = @transform_7, window_bounds = array<i64: 32, 128>}, {pipeline_mode = #tpu.pipeline_mode<synchronous>, transform_indices = @transform_8, window_bounds = array<i64: 128, 32>}, {pipeline_mode = #tpu.pipeline_mode<synchronous>, transform_indices = @transform_9, window_bounds = array<i64: 32, 128>}, {pipeline_mode = #tpu.pipeline_mode<synchronous>, transform_indices = @transform_10, window_bounds = array<i64: 1, 128>}, {transform_indices = @transform_11, window_bounds = array<i64: 8, 128>}]} {
    %c0 = arith.constant 0 : index
    %c0_0 = arith.constant 0 : index
    %0 = vector.load %arg1[%c0, %c0_0] : memref<64x32xbf16, #tpu.memory_space<vmem>>, vector<64x32xbf16>
    %c0_1 = arith.constant 0 : index
    %c0_2 = arith.constant 0 : index
    %1 = vector.load %arg2[%c0_1, %c0_2] : memref<8x32xbf16, #tpu.memory_space<vmem>>, vector<8x32xbf16>
    %c0_3 = arith.constant 0 : index
    %c0_4 = arith.constant 0 : index
    %2 = vector.load %arg3[%c0_3, %c0_4] : memref<8x8xf32, #tpu.memory_space<vmem>>, vector<8x8xf32>
    %c0_5 = arith.constant 0 : index
    %c0_6 = arith.constant 0 : index
    %3 = vector.load %arg5[%c0_5, %c0_6] : memref<32x32xbf16, #tpu.memory_space<vmem>>, vector<32x32xbf16>
    %cst = arith.constant dense<0.000000e+00> : vector<64x32xf32>
    %4 = tpu.matmul %0, %3, %cst {dimension_numbers = #tpu.dot_dimension_numbers<[1], [0], [0], [1], [0, 0, 1, 1], [], []>} : vector<64x32xbf16>, vector<32x32xbf16>, vector<64x32xf32> -> vector<64x32xf32>
    %c0_7 = arith.constant 0 : index
    %c0_8 = arith.constant 0 : index
    %5 = vector.load %arg6[%c0_7, %c0_8] : memref<32x32xbf16, #tpu.memory_space<vmem>>, vector<32x32xbf16>
    %cst_9 = arith.constant dense<0.000000e+00> : vector<64x32xf32>
    %6 = tpu.matmul %0, %5, %cst_9 {dimension_numbers = #tpu.dot_dimension_numbers<[1], [0], [0], [1], [0, 0, 1, 1], [], []>} : vector<64x32xbf16>, vector<32x32xbf16>, vector<64x32xf32> -> vector<64x32xf32>
    %c0_10 = arith.constant 0 : index
    %c0_11 = arith.constant 0 : index
    %7 = vector.load %arg4[%c0_10, %c0_11] : memref<32x32xbf16, #tpu.memory_space<vmem>>, vector<32x32xbf16>
    %cst_12 = arith.constant dense<0.000000e+00> : vector<8x32xf32>
    %8 = tpu.matmul %1, %7, %cst_12 {dimension_numbers = #tpu.dot_dimension_numbers<[1], [0], [0], [1], [0, 0, 1, 1], [], []>} : vector<8x32xbf16>, vector<32x32xbf16>, vector<8x32xf32> -> vector<8x32xf32>
    %9 = vector.shape_cast %4 : vector<64x32xf32> to vector<8x8x32xf32>
    %10 = vector.shape_cast %6 : vector<64x32xf32> to vector<8x8x32xf32>
    %11 = vector.shape_cast %8 : vector<8x32xf32> to vector<8x1x32xf32>
    %12 = vector.broadcast %11 : vector<8x1x32xf32> to vector<8x8x32xf32>
    %13 = arith.mulf %12, %9 : vector<8x8x32xf32>
    %cst_13 = arith.constant dense<0.000000e+00> : vector<8x8xf32>
    %14 = vector.multi_reduction <add>, %13, %cst_13 [2] : vector<8x8x32xf32> to vector<8x8xf32>
    %cst_14 = arith.constant 0.176776692 : f32
    %15 = vector.broadcast %cst_14 : f32 to vector<8x8xf32>
    %16 = arith.mulf %14, %15 : vector<8x8xf32>
    %cst_15 = arith.constant 1.000000e+00 : f32
    %17 = vector.broadcast %cst_15 : f32 to vector<8x8xf32>
    %18 = arith.subf %2, %17 : vector<8x8xf32>
    %cst_16 = arith.constant 1.000000e+09 : f32
    %19 = vector.broadcast %cst_16 : f32 to vector<8x8xf32>
    %20 = arith.mulf %18, %19 : vector<8x8xf32>
    %21 = arith.addf %16, %20 : vector<8x8xf32>
    %cst_17 = arith.constant dense<0xFF800000> : vector<8xf32>
    %22 = vector.multi_reduction <maximumf>, %21, %cst_17 [1] : vector<8x8xf32> to vector<8xf32>
    %23 = vector.shape_cast %22 : vector<8xf32> to vector<8x1xf32>
    %24 = vector.broadcast %23 : vector<8x1xf32> to vector<8x8xf32>
    %25 = arith.subf %21, %24 : vector<8x8xf32>
    %26 = math.exp %25 : vector<8x8xf32>
    %cst_18 = arith.constant dense<0.000000e+00> : vector<8xf32>
    %27 = vector.multi_reduction <add>, %26, %cst_18 [1] : vector<8x8xf32> to vector<8xf32>
    %28 = vector.shape_cast %27 : vector<8xf32> to vector<8x1xf32>
    %29 = tpu.reciprocal %28 {approx = true} : vector<8x1xf32> -> vector<8x1xf32>
    %30 = vector.broadcast %29 : vector<8x1xf32> to vector<8x8xf32>
    %31 = arith.mulf %26, %30 : vector<8x8xf32>
    %32 = vector.shape_cast %31 : vector<8x8xf32> to vector<8x8x1xf32>
    %33 = vector.broadcast %32 : vector<8x8x1xf32> to vector<8x8x32xf32>
    %34 = arith.mulf %33, %10 : vector<8x8x32xf32>
    %cst_19 = arith.constant dense<0.000000e+00> : vector<8x32xf32>
    %35 = vector.multi_reduction <add>, %34, %cst_19 [1] : vector<8x8x32xf32> to vector<8x32xf32>
    %36 = arith.truncf %35 : vector<8x32xf32> to vector<8x32xbf16>
    %c0_20 = arith.constant 0 : index
    %c0_21 = arith.constant 0 : index
    %37 = vector.load %arg7[%c0_20, %c0_21] : memref<32x32xbf16, #tpu.memory_space<vmem>>, vector<32x32xbf16>
    %cst_22 = arith.constant dense<0.000000e+00> : vector<8x32xf32>
    %38 = tpu.matmul %36, %37, %cst_22 {dimension_numbers = #tpu.dot_dimension_numbers<[1], [0], [0], [1], [0, 0, 1, 1], [], []>} : vector<8x32xbf16>, vector<32x32xbf16>, vector<8x32xf32> -> vector<8x32xf32>
    %39 = arith.extf %1 : vector<8x32xbf16> to vector<8x32xf32>
    %40 = arith.addf %39, %38 : vector<8x32xf32>
    %41 = arith.truncf %40 : vector<8x32xf32> to vector<8x32xbf16>
    %c0_23 = arith.constant 0 : index
    %c0_24 = arith.constant 0 : index
    %42 = vector.load %arg8[%c0_23, %c0_24] : memref<32x128xbf16, #tpu.memory_space<vmem>>, vector<32x128xbf16>
    %cst_25 = arith.constant dense<0.000000e+00> : vector<8x128xf32>
    %43 = tpu.matmul %41, %42, %cst_25 {dimension_numbers = #tpu.dot_dimension_numbers<[1], [0], [0], [1], [0, 0, 1, 1], [], []>} : vector<8x32xbf16>, vector<32x128xbf16>, vector<8x128xf32> -> vector<8x128xf32>
    %cst_26 = arith.constant 0.000000e+00 : f32
    %44 = vector.broadcast %cst_26 : f32 to vector<8x128xf32>
    %45 = arith.maximumf %43, %44 : vector<8x128xf32>
    %46 = arith.truncf %45 : vector<8x128xf32> to vector<8x128xbf16>
    %c0_27 = arith.constant 0 : index
    %c0_28 = arith.constant 0 : index
    %47 = vector.load %arg9[%c0_27, %c0_28] : memref<128x32xbf16, #tpu.memory_space<vmem>>, vector<128x32xbf16>
    %cst_29 = arith.constant dense<0.000000e+00> : vector<8x32xf32>
    %48 = tpu.matmul %46, %47, %cst_29 {dimension_numbers = #tpu.dot_dimension_numbers<[1], [0], [0], [1], [0, 0, 1, 1], [], []>} : vector<8x128xbf16>, vector<128x32xbf16>, vector<8x32xf32> -> vector<8x32xf32>
    %49 = arith.addf %40, %48 : vector<8x32xf32>
    %50 = arith.truncf %49 : vector<8x32xf32> to vector<8x32xbf16>
    %c0_30 = arith.constant 0 : index
    %c0_31 = arith.constant 0 : index
    %51 = vector.load %arg10[%c0_30, %c0_31] : memref<32x128xbf16, #tpu.memory_space<vmem>>, vector<32x128xbf16>
    %cst_32 = arith.constant dense<0.000000e+00> : vector<8x128xf32>
    %52 = tpu.matmul %50, %51, %cst_32 {dimension_numbers = #tpu.dot_dimension_numbers<[1], [0], [0], [1], [0, 0, 1, 1], [], []>} : vector<8x32xbf16>, vector<32x128xbf16>, vector<8x128xf32> -> vector<8x128xf32>
    %c0_33 = arith.constant 0 : index
    %c0_34 = arith.constant 0 : index
    %53 = vector.load %arg11[%c0_33, %c0_34] : memref<1x128xf32, #tpu.memory_space<vmem>>, vector<1x128xf32>
    %54 = vector.broadcast %53 : vector<1x128xf32> to vector<8x128xf32>
    %55 = arith.addf %52, %54 : vector<8x128xf32>
    %cst_35 = arith.constant dense<0xFF800000> : vector<8xf32>
    %56 = vector.multi_reduction <maximumf>, %55, %cst_35 [1] : vector<8x128xf32> to vector<8xf32>
    %57 = vector.shape_cast %56 : vector<8xf32> to vector<8x1xf32>
    %58 = vector.broadcast %57 : vector<8x1xf32> to vector<8x128xf32>
    %59 = arith.subf %55, %58 : vector<8x128xf32>
    %60 = math.exp %59 : vector<8x128xf32>
    %cst_36 = arith.constant dense<0.000000e+00> : vector<8xf32>
    %61 = vector.multi_reduction <add>, %60, %cst_36 [1] : vector<8x128xf32> to vector<8xf32>
    %62 = vector.shape_cast %61 : vector<8xf32> to vector<8x1xf32>
    %63 = tpu.reciprocal %62 : vector<8x1xf32> -> vector<8x1xf32>
    %64 = vector.broadcast %63 : vector<8x1xf32> to vector<8x128xf32>
    %65 = arith.mulf %60, %64 : vector<8x128xf32>
    %c0_37 = arith.constant 0 : index
    %c0_38 = arith.constant 0 : index
    %66 = vector.load %arg12[%c0_37, %c0_38] : memref<8x128xf32, #tpu.memory_space<vmem>>, vector<8x128xf32>
    tpu.vector_store %arg12[%c0_37, %c0_38], %65 {strides = array<i32>} : memref<8x128xf32, #tpu.memory_space<vmem>>, vector<8x128xf32>,
    return
  }
  func.func @transform_0(%arg0: i32) -> (i32, i32) {
    %c0_i32 = arith.constant 0 : i32
    %c0_i32_0 = arith.constant 0 : i32
    return %arg0, %c0_i32 : i32, i32
  }
  func.func @transform_1(%arg0: i32) -> (i32, i32) {
    %c0_i32 = arith.constant 0 : i32
    %c0_i32_0 = arith.constant 0 : i32
    return %arg0, %c0_i32 : i32, i32
  }
  func.func @transform_2(%arg0: i32) -> (i32, i32) {
    %c0_i32 = arith.constant 0 : i32
    %c0_i32_0 = arith.constant 0 : i32
    return %arg0, %c0_i32 : i32, i32
  }
  func.func @transform_3(%arg0: i32) -> (i32, i32) {
    %c0_i32 = arith.constant 0 : i32
    %c0_i32_0 = arith.constant 0 : i32
    %c0_i32_1 = arith.constant 0 : i32
    return %c0_i32, %c0_i32_0 : i32, i32
  }
  func.func @transform_4(%arg0: i32) -> (i32, i32) {
    %c0_i32 = arith.constant 0 : i32
    %c0_i32_0 = arith.constant 0 : i32
    %c0_i32_1 = arith.constant 0 : i32
    return %c0_i32, %c0_i32_0 : i32, i32
  }
  func.func @transform_5(%arg0: i32) -> (i32, i32) {
    %c0_i32 = arith.constant 0 : i32
    %c0_i32_0 = arith.constant 0 : i32
    %c0_i32_1 = arith.constant 0 : i32
    return %c0_i32, %c0_i32_0 : i32, i32
  }
  func.func @transform_6(%arg0: i32) -> (i32, i32) {
    %c0_i32 = arith.constant 0 : i32
    %c0_i32_0 = arith.constant 0 : i32
    %c0_i32_1 = arith.constant 0 : i32
    return %c0_i32, %c0_i32_0 : i32, i32
  }
  func.func @transform_7(%arg0: i32) -> (i32, i32) {
    %c0_i32 = arith.constant 0 : i32
    %c0_i32_0 = arith.constant 0 : i32
    %c0_i32_1 = arith.constant 0 : i32
    return %c0_i32, %c0_i32_0 : i32, i32
  }
  func.func @transform_8(%arg0: i32) -> (i32, i32) {
    %c0_i32 = arith.constant 0 : i32
    %c0_i32_0 = arith.constant 0 : i32
    %c0_i32_1 = arith.constant 0 : i32
    return %c0_i32, %c0_i32_0 : i32, i32
  }
  func.func @transform_9(%arg0: i32) -> (i32, i32) {
    %c0_i32 = arith.constant 0 : i32
    %c0_i32_0 = arith.constant 0 : i32
    %c0_i32_1 = arith.constant 0 : i32
    return %c0_i32, %c0_i32_0 : i32, i32
  }
  func.func @transform_10(%arg0: i32) -> (i32, i32) {
    %c0_i32 = arith.constant 0 : i32
    %c0_i32_0 = arith.constant 0 : i32
    %c0_i32_1 = arith.constant 0 : i32
    return %c0_i32, %c0_i32_0 : i32, i32
  }
  func.func @transform_11(%arg0: i32) -> (i32, i32) {
    %c0_i32 = arith.constant 0 : i32
    %c0_i32_0 = arith.constant 0 : i32
    return %arg0, %c0_i32 : i32, i32
  }
}

</mosaic_0001>

<bundles_post_ra>
// kernel: tpu_custom_call.1
= control target key start
LH: loop header
LB: loop body
LE: loop exit
PB: predicated region body
PF: predicated region fallthrough
CT: control target
= control target key end

     0   :  { %vm86_vm0 = vcmask 261120   ;;  %v309_v3 = vlaneseq  ;;  %v1467_v17 = vmov 0.0   ;;  %vm1468_vm1 = vmmov 0   ;;  %s1842_s0 = inlined_call_operand.vmem [shape: bf16[64,32], index: 0, kind: input, shape index: {}]   ;;  %s1843_s1 = inlined_call_operand.vmem [shape: bf16[8,32], index: 1, kind: input, shape index: {}]   ;;  %s1844_s2 = inlined_call_operand.vmem [shape: f32[8,8], index: 2, kind: input, shape index: {}]   ;;  %s1845_s3 = inlined_call_operand.vmem [shape: bf16[32,32], index: 3, kind: input, shape index: {}]   ;;  %s1846_s4 = inlined_call_operand.vmem [shape: bf16[32,32], index: 4, kind: input, shape index: {}]   ;;  %s1847_s5 = inlined_call_operand.vmem [shape: bf16[32,32], index: 5, kind: input, shape index: {}]   ;;  %s1848_s6 = inlined_call_operand.vmem [shape: bf16[32,32], index: 6, kind: input, shape index: {}]   ;;  %s1849_s7 = inlined_call_operand.vmem [shape: bf16[32,128], index: 7, kind: input, shape index: {}]   ;;  %s1850_s8 = inlined_call_operand.vmem [shape: bf16[128,32], index: 8, kind: input, shape index: {}]   ;;  %s1851_s9 = inlined_call_operand.vmem [shape: bf16[32,128], index: 9, kind: input, shape index: {}]   ;;  %s1852_s10 = inlined_call_operand.vmem [shape: f32[1,128], index: 10, kind: input, shape index: {}]   ;;  %s1853_s11 = inlined_call_operand.hbm [shape: f32[8,128], index: 11, kind: output, shape index: {}]  }
   0x1   :  { %v1397_v0 = vld [vmem:[%s1846_s4] sm:$0xff]   ;;  %v1398_v1 = vld [vmem:[%s1846_s4 + $0x8] sm:$0xff]   ;;  %v1402_v6 = vld [vmem:[%s1842_s0 + $0x10] sm:$0xff]  }
   0x2   :  { %1310 = vmatprep.subr.bf16.mxu0 %v1397_v0  ;;  %v1399_v2 = vld [vmem:[%s1842_s0] sm:$0xff]   ;;  %v1400_v5 = vld [vmem:[%s1842_s0 + $0x8] sm:$0xff]   ;;  %v1552_v7 = vshrl.u32 %v309_v3, 7  ;;  %1330 = vmatprep.mubr.msk.bf16.mxu1 %vm86_vm0, %v1402_v6  ;;  %v1403_v15 = vld [vmem:[%s1842_s0 + $0x18] sm:$0xff]  }
   0x3   :  { %1311 = vmatpush3.bf16.msra.mxu0 %v1397_v0  ;;  %1314 = vmatprep.mubr.msk.bf16.mxu0 %vm86_vm0, %v1399_v2  ;;  %v1401_v4 = vld [vmem:[%s1847_s5] sm:$0xff]   ;;  %v1404_v8 = vld [vmem:[%s1847_s5 + $0x8] sm:$0xff]  }
   0x4   :  { %1312 = vmatprep.subr.bf16.mxu0 %v1398_v1  ;;  %1386 = vmatprep.subr.bf16.mxu1 %v1401_v4  ;;  %v49_v9 = vld [vmem:[%s1844_s2] sm:$0xff]  ;;  %v1563_v10 = vsub.s32 1, %v1552_v7  ;;  %v1566_v11 = vsub.s32 2, %v1552_v7  ;;  %v1569_v12 = vsub.s32 3, %v1552_v7  ;;  %v1573_v14 = vsub.s32 0, %v1552_v7 }
   0x5   :  { %1388 = vmatpush3.bf16.msra.mxu1 %v1401_v4  ;;  %v1258_v13 = vadd.f32 -1.0, %v49_v9  ;;  %v1596_v22 = vsub.s32 5, %v1552_v7 }
   0x6   :  { %1387 = vmatprep.subr.bf16.mxu1 %v1404_v8 }
   0x7   :  { %1313 = vmatpush3.bf16.msra.mxu0 %v1398_v1  ;;  %v1578_v16 = vmul.f32 1e+09, %v1258_v13 }
   0x8   :  { %1322 = vmatprep.subr.bf16.mxu0 %v1401_v4 }
   0x9   :  { %1389 = vmatpush3.bf16.msra.mxu1 %v1404_v8  ;;  %v447_v18 = vrot.slane %v1578_v16, %v1563_v10  ;;  %v440_v19 = vrot.slane %v1578_v16, %v1573_v14  ;;  %v454_v20 = vrot.slane %v1578_v16, %v1566_v11  ;;  %v461_v21 = vrot.slane %v1578_v16, %v1569_v12 }
   0xa   :  { %1315 = vmatmul.mubr.msk.bf16.vlgmr.msra.gmra.mrb[0].mxu0 %vm86_vm0, %v1400_v5  ;;  %1342 = vmatprep.subr.bf16.mxu1 %v1467_v17 }
   0xb   :  { %1323 = vmatpush3.bf16.msra.mxu0 %v1401_v4  ;;  %1318 = vmatprep.mubr.msk.bf16.mxu0 %vm86_vm0, %v1402_v6 }
   0xc   :  { %1324 = vmatprep.subr.bf16.mxu0 %v1404_v8  ;;  %1331 = vmatmul.mubr.msk.bf16.vlgmr.msra.gmra.mrb[0].mxu1 %vm86_vm0, %v1403_v15 }
   0xd   :  { %449 = vbcast.lane.b32.xlu1 %v447_v18, 256  ;;  %442 = vbcast.lane.b32.xlu0 %v440_v19, 256 }
   0xe   :  { %1346 = vmatprep.mubr.msk.bf16.mxu1 %vm1468_vm1, %v1467_v17 }
   0xf   :  { %1325 = vmatpush3.bf16.msra.mxu0 %v1404_v8 }
  0x10   :  { %1334 = vmatprep.subr.bf16.mxu0 %v1467_v17 }
  0x11   :  { %456 = vbcast.lane.b32.xlu1 %v454_v20, 256 }
  0x12   :  { %1319 = vmatmul.mubr.msk.bf16.gmra.mrb[4].mxu0 %vm86_vm0, %v1403_v15 }
  0x13   :  { %1326 = vmatprep.mubr.msk.bf16.mxu0 %vm86_vm0, %v1399_v2 }
  0x14   :  { %16 = vsyncpa [#allocation3], 0  ;;  %v1405_v23 = vld [vmem:[%s1845_s3] sm:$0xff]   ;;  %v475_v24 = vrot.slane %v1578_v16, %v1596_v22  ;;  %v1406_v25 = vld [vmem:[%s1845_s3 + $0x8] sm:$0xff]   ;;  %v1621_v27 = vsub.s32 4, %v1552_v7  ;;  %vm575_vm2 = vcmask 1041409  }
  0x15   :  { %463 = vbcast.lane.b32.xlu1 %v461_v21, 256  ;;  %v1613_v26 = vld [vmem:[%s1843_s1] sm:$0xf]  ;;  %v1469_v37 = vmov 1966171168   ;;  %vm577_vm3 = vcmask 1042434  }
  0x16   :  { %v468_v28 = vrot.slane %v1578_v16, %v1621_v27  ;;  %v307_v38 = vunpack.c.l.s4 %v1469_v37  ;;  %vm579_vm4 = vcmask 1043459   ;;  %vm581_vm5 = vcmask 1044484  }
  0x17   :  { %vm583_vm6 = vcmask 1045509   ;;  %vm585_vm7 = vcmask 1046534   ;;  %vm587_vm8 = vcmask 1047559   ;;  %vm590_vm9 = vcmask 64512  }
  0x18   :  { %470 = vbcast.lane.b32.xlu0 %v468_v28, 256  ;;  %v308_v41 = vunpack.c.0.s8 %v307_v38 }
  0x19   :  { %477 = vbcast.lane.b32.xlu1 %v475_v24, 256 }
  0x1a   :  { %1327 = vmatmul.mubr.msk.bf16.vlgmr.msra.gmra.mrb[8].mxu0 %vm86_vm0, %v1400_v5  ;;  %v311_v44 = vsub.s32 %v308_v41, %v1552_v7 }
  0x1b   :  { %1335 = vmatpush3.bf16.msra.mxu0 %v1405_v23  ;;  %1338 = vmatprep.mubr.msk.bf16.mxu0 %vm1468_vm1, %v1467_v17 }
  0x1c   :  { %1336 = vmatprep.subr.bf16.mxu0 %v1467_v17 }
  0x1f   :  { %1337 = vmatpush3.bf16.msra.mxu0 %v1406_v25 }
  0x20   :  { %1350 = vmatprep.subr.bf16.mxu0 %v1467_v17 }
  0x22   :  { %1339 = vmatmul.mubr.msk.bf16.vlgmr.msra.gmra.mrb[12].mxu0 %vm86_vm0, %v1613_v26 }
  0x23   :  { %1354 = vmatprep.mubr.msk.bf16.mxu0 %vm1468_vm1, %v1467_v17 }
  0x7f   :  { %v450_v38 = vpop.permute.xlu1 %449 }
  0x83   :  { %v457_v41 = vpop.permute.xlu1 %456 }
  0xdd   :  { %v1316_v29 = vpop.f32.mrb[0].mxu0 }
  0xde   :  { %v133_v30 = vpop.f32.mrb[1].mxu0 }
  0xdf   :  { %v1317_v31 = vpop.f32.mrb[2].mxu0 }
  0xe0   :  { %v136_v32 = vpop.f32.mrb[3].mxu0 }
  0xe5   :  { %v1320_v33 = vpop.f32.mrb[4].mxu0 }
  0xe6   :  { %v149_v34 = vpop.f32.mrb[5].mxu0 }
  0xe7   :  { %v1321_v35 = vpop.f32.mrb[6].mxu0 }
  0xe8   :  { %v152_v36 = vpop.f32.mrb[7].mxu0 }
  0xed   :  { %v1625_v39 = vpop.f32.mrb[8].mxu0 }
  0xee   :  { %v1627_v40 = vpop.f32.mrb[9].mxu0 }
  0xef   :  { %v1629_v42 = vpop.f32.mrb[10].mxu0 }
  0xf0   :  { %v1631_v43 = vpop.f32.mrb[11].mxu0 }
  0xf5   :  { %v298_v45 = vpop.f32.mrb[12].mxu0 }
  0xf6   :  { %v305_v46 = vcombine.high %v298_v45, %v298_v45  ;;  %v312_v47 = vrot.slane %v298_v45, %v311_v44  ;;  %v1340_v48 = vpop.f32.mrb[13].mxu0  ;;  %v464_v45 = vpop.permute.xlu1 %463 }
  0xf7   :  { %v301_v49 = vpop.f32.mrb[14].mxu0 }
  0xf8   :  { %v319_v50 = vrot.slane %v305_v46, %v311_v44  ;;  %v320_v51 = vcombine.high %v312_v47, %v312_v47  ;;  %v328_v52 = vrot.slane %v312_v47, %v311_v44  ;;  %v1341_v53 = vpop.f32.mrb[15].mxu0 }
  0xfa   :  { %v321_v54 = vcombine.high %v319_v50, %v319_v50  ;;  %v335_v55 = vrot.slane %v319_v50, %v311_v44  ;;  %v342_v56 = vrot.slane %v320_v51, %v311_v44  ;;  %v350_v57 = vcombine.high %v328_v52, %v328_v52  ;;  %v478_v47 = vpop.permute.xlu1 %477 }
  0xfb   :  { %v357_v58 = vrot.slane %v328_v52, %v1573_v14 }
  0xfc   :  { %v365_v59 = vrot.slane %v350_v57, %v1573_v14  ;;  %v361_v60 = vrot.slane %v342_v56, %v1573_v14  ;;  %v352_v61 = vcombine.high %v342_v56, %v342_v56  ;;  %v373_v62 = vrot.slane %v335_v55, %v1573_v14 }
  0xfd   :  { %v394_v63 = vmul.f32 %v357_v58, %v133_v30  ;;  %v349_v0 = vrot.slane %v321_v54, %v311_v44  ;;  %v351_v1 = vcombine.high %v335_v55, %v335_v55  ;;  %v443_v44 = vpop.permute.xlu0 %442 }
  0xfe   :  { %v396_v2 = vmul.f32 %v1316_v29, %v365_v59  ;;  %v395_v4 = vmul.f32 %v361_v60, %v136_v32  ;;  %v369_v5 = vrot.slane %v352_v61, %v1573_v14  ;;  %v398_v6 = vmul.f32 %v373_v62, %v149_v34 }
  0xff   :  { %v402_v8 = vsel %vm86_vm0, %v394_v63, 0.0  ;;  %v377_v9 = vrot.slane %v349_v0, %v1573_v14  ;;  %v381_v13 = vrot.slane %v351_v1, %v1573_v14  ;;  %v353_v15 = vcombine.high %v349_v0, %v349_v0 }
 0x100   :  { %403 = vadd.xlane.f32.xlu0 %v402_v8  ;;  %v408_v18 = vsel %vm86_vm0, %v396_v2, 0.0  ;;  %v397_v19 = vmul.f32 %v1317_v31, %v369_v5  ;;  %v405_v24 = vsel %vm86_vm0, %v395_v4, 0.0  ;;  %v414_v29 = vsel %vm86_vm0, %v398_v6, 0.0 }
 0x101   :  { %409 = vadd.xlane.f32.xlu1 %v408_v18  ;;  %v399_v20 = vmul.f32 %v377_v9, %v152_v36  ;;  %v400_v21 = vmul.f32 %v1320_v33, %v381_v13  ;;  %v385_v23 = vrot.slane %v353_v15, %v1573_v14  ;;  %v1470_v33 = vmov 0   ;;  %v471_v46 = vpop.permute.xlu0 %470 }
 0x102   :  { %v411_v28 = vsel %vm86_vm0, %v397_v19, 0.0  ;;  %1395 = vset.pattern.permute.xlu0 %v1470_v33  ;;  %1396 = vset.pattern.permute.xlu1 %v1470_v33  ;;  %v1651_v34 = vsub.s32 7, %v1552_v7  ;;  %v542_v15 = vand.u32 127, %v309_v3 }
 0x103   :  { %v401_v25 = vmul.f32 %v1321_v35, %v385_v23  ;;  %v417_v30 = vsel %vm86_vm0, %v399_v20, 0.0  ;;  %v420_v31 = vsel %vm86_vm0, %v400_v21, 0.0  ;;  %v1654_v35 = vsub.s32 6, %v1552_v7 }
 0x104   :  { %406 = vadd.xlane.f32.xlu0 %v405_v24  ;;  %v489_v36 = vrot.slane %v1578_v16, %v1651_v34  ;;  %v1680_v19 = vsub.s32 %v542_v15, %v1552_v7 }
 0x105   :  { %412 = vadd.xlane.f32.xlu1 %v411_v28  ;;  %v423_v32 = vsel %vm86_vm0, %v401_v25, 0.0  ;;  %v482_v37 = vrot.slane %v1578_v16, %v1654_v35 }
 0x108   :  { %415 = vadd.xlane.f32.xlu0 %v414_v29 }
 0x109   :  { %418 = vadd.xlane.f32.xlu1 %v417_v30 }
 0x10c   :  { %421 = vadd.xlane.f32.xlu0 %v420_v31 }
 0x10d   :  { %424 = vadd.xlane.f32.xlu1 %v423_v32 }
 0x11e   :  { %491 = vbcast.lane.b32.xlu1 %v489_v36, 256 }
 0x122   :  { %484 = vbcast.lane.b32.xlu0 %v482_v37, 256 }
 0x18d   :  { %v404_v48 = vpop.xlane.xlu0 %403 }
 0x18e   :  { %v426_v49 = vmul.f32 0.17677669, %v404_v48  ;;  %v410_v50 = vpop.xlane.xlu1 %409 }
 0x18f   :  { %v428_v16 = vmul.f32 0.17677669, %v410_v50 }
 0x190   :  { %v1660_v51 = vadd.f32 %v443_v44, %v426_v49 }
 0x191   :  { %v407_v52 = vpop.xlane.xlu0 %406  ;;  %v503_v61 = vadd.f32 %v457_v41, %v428_v16 }
 0x192   :  { %v427_v53 = vmul.f32 0.17677669, %v407_v52  ;;  %518 = vperm.xlu0 %1395, %v1660_v51   ;;  %v413_v54 = vpop.xlane.xlu1 %412 }
 0x193   :  { %v429_v55 = vmul.f32 0.17677669, %v413_v54 }
 0x194   :  { %v1663_v56 = vadd.f32 %v450_v38, %v427_v53 }
 0x195   :  { %v1665_v57 = vadd.f32 %v464_v45, %v429_v55  ;;  %v416_v58 = vpop.xlane.xlu0 %415 }
 0x196   :  { %521 = vperm.xlu1 %1396, %v1663_v56   ;;  %v419_v59 = vpop.xlane.xlu1 %418  ;;  %v430_v62 = vmul.f32 0.17677669, %v416_v58 }
 0x197   :  { %v431_v60 = vmul.f32 0.17677669, %v419_v59  ;;  %527 = vperm.xlu0 %1395, %v1665_v57  }
 0x198   :  { %v505_v2 = vadd.f32 %v471_v46, %v430_v62 }
 0x199   :  { %v1669_v63 = vadd.f32 %v478_v47, %v431_v60  ;;  %v422_v0 = vpop.xlane.xlu0 %421 }
 0x19a   :  { %524 = vperm.xlu1 %1396, %v503_v61   ;;  %v425_v1 = vpop.xlane.xlu1 %424  ;;  %v432_v6 = vmul.f32 0.17677669, %v422_v0 }
 0x19b   :  { %533 = vperm.xlu0 %1395, %v1669_v63   ;;  %v433_v4 = vmul.f32 0.17677669, %v425_v1 }
 0x19d   :  { %v485_v5 = vpop.permute.xlu0 %484 }
 0x19e   :  { %530 = vperm.xlu1 %1396, %v505_v2   ;;  %v492_v8 = vpop.permute.xlu1 %491  ;;  %v1674_v13 = vadd.f32 %v485_v5, %v432_v6 }
 0x19f   :  { %v1672_v9 = vadd.f32 %v492_v8, %v433_v4 }
 0x1a1   :  { %539 = vperm.xlu0 %1395, %v1672_v9  }
 0x1a2   :  { %536 = vperm.xlu1 %1396, %v1674_v13  }
 0x211   :  { %v519_v18 = vpop.permute.xlu0 %518 }
 0x212   :  { %v546_v24 = vrot.slane %v519_v18, %v1680_v19 }
 0x215   :  { %v522_v20 = vpop.permute.xlu1 %521 }
 0x216   :  { %v528_v21 = vpop.permute.xlu0 %527  ;;  %v550_v23 = vrot.slane %v522_v20, %v1680_v19 }
 0x217   :  { %v558_v7 = vrot.slane %v528_v21, %v1680_v19 }
 0x218   :  { %v576_v29 = vsel %vm575_vm2, %v550_v23, %v546_v24 }
 0x219   :  { %v525_v25 = vpop.permute.xlu1 %524 }
 0x21a   :  { %v554_v28 = vrot.slane %v525_v25, %v1680_v19  ;;  %v534_v3 = vpop.permute.xlu0 %533 }
 0x21b   :  { %v566_v38 = vrot.slane %v534_v3, %v1680_v19 }
 0x21c   :  { %v578_v30 = vsel %vm577_vm3, %v554_v28, %v576_v29 }
 0x21d   :  { %v531_v31 = vpop.permute.xlu1 %530  ;;  %v580_v33 = vsel %vm579_vm4, %v558_v7, %v578_v30 }
 0x21e   :  { %v562_v32 = vrot.slane %v531_v31, %v1680_v19 }
 0x220   :  { %v582_v36 = vsel %vm581_vm5, %v562_v32, %v580_v33  ;;  %v540_v37 = vpop.permute.xlu0 %539 }
 0x221   :  { %v574_v41 = vrot.slane %v540_v37, %v1680_v19  ;;  %v537_v44 = vpop.permute.xlu1 %536  ;;  %v584_v46 = vsel %vm583_vm6, %v566_v38, %v582_v36 }
 0x222   :  { %v570_v45 = vrot.slane %v537_v44, %v1680_v19 }
 0x224   :  { %v586_v47 = vsel %vm585_vm7, %v570_v45, %v584_v46 }
 0x225   :  { %v588_v48 = vsel %vm587_vm8, %v574_v41, %v586_v47 }
 0x226   :  { %v591_v49 = vsel %vm590_vm9, %v588_v48, -inf }
 0x227   :  { %592 = vmax.xlane.f32.xlu1 %v591_v49 }
 0x2b4   :  { %v593_v50 = vpop.xlane.xlu1 %592 }
 0x2b5   :  { %v598_v52 = vrot.slane %v593_v50, %v1573_v14  ;;  %v602_v53 = vrot.slane %v593_v50, %v1563_v10  ;;  %v606_v54 = vrot.slane %v593_v50, %v1566_v11  ;;  %v610_v59 = vrot.slane %v593_v50, %v1569_v12 }
 0x2b6   :  { %v614_v0 = vrot.slane %v593_v50, %v1621_v27  ;;  %v618_v5 = vrot.slane %v593_v50, %v1596_v22 }
 0x2b7   :  { %v635_v55 = vsub.f32 %v1660_v51, %v598_v52  ;;  %v636_v16 = vsub.f32 %v1663_v56, %v602_v53  ;;  %v637_v60 = vsub.f32 %v503_v61, %v606_v54  ;;  %v638_v1 = vsub.f32 %v1665_v57, %v610_v59 }
 0x2b8   :  { %v639_v6 = vsub.f32 %v505_v2, %v614_v0  ;;  %v622_v56 = vrot.slane %v593_v50, %v1654_v35  ;;  %v640_v61 = vsub.f32 %v1669_v63, %v618_v5  ;;  %v626_v57 = vrot.slane %v593_v50, %v1651_v34 }
 0x2b9   :  { %v643_v58 = vmul.f32 1.442695, %v635_v55  ;;  %v645_v62 = vmul.f32 1.442695, %v636_v16  ;;  %v647_v4 = vmul.f32 1.442695, %v637_v60 }
 0x2ba   :  { %v649_v8 = vmul.f32 1.442695, %v638_v1  ;;  %v651_v15 = vmul.f32 1.442695, %v639_v6  ;;  %v641_v20 = vsub.f32 %v1674_v13, %v622_v56  ;;  %v653_v2 = vmul.f32 1.442695, %v640_v61 }
 0x2bb   :  { %1421 = vpow2.f32 %v643_v58  ;;  %v642_v23 = vsub.f32 %v1672_v9, %v626_v57  ;;  %v1731_v60 = vpop.f32.mrb[0].mxu1 }
 0x2bc   :  { %1423 = vpow2.f32 %v645_v62  ;;  %v655_v24 = vmul.f32 1.442695, %v641_v20  ;;  %v230_v62 = vpop.f32.mrb[1].mxu1 }
 0x2bd   :  { %1425 = vpow2.f32 %v647_v4  ;;  %v657_v63 = vmul.f32 1.442695, %v642_v23 }
 0x2be   :  { %1427 = vpow2.f32 %v649_v8 }
 0x2bf   :  { %1429 = vpow2.f32 %v651_v15 }
 0x2c0   :  { %1431 = vpow2.f32 %v653_v2 }
 0x2c1   :  { %1433 = vpow2.f32 %v655_v24 }
 0x2c2   :  { %1435 = vpow2.f32 %v657_v63 }
 0x2c5   :  { %v1707_v51 = vpop.eup %1421 }
 0x2c6   :  { %668 = vperm.xlu0 %1395, %v1707_v51   ;;  %v1424_v18 = vpop.eup %1423 }
 0x2c7   :  { %v1426_v21 = vpop.eup %1425 }
 0x2c8   :  { %v1428_v25 = vpop.eup %1427 }
 0x2c9   :  { %v1430_v28 = vpop.eup %1429 }
 0x2ca   :  { %671 = vperm.xlu0 %1395, %v1424_v18   ;;  %v1432_v29 = vpop.eup %1431 }
 0x2cb   :  { %v1434_v30 = vpop.eup %1433 }
 0x2cc   :  { %v1436_v13 = vpop.eup %1435 }
 0x2ce   :  { %674 = vperm.xlu0 %1395, %v1426_v21  }
 0x2d2   :  { %677 = vperm.xlu0 %1395, %v1428_v25  }
 0x2d6   :  { %680 = vperm.xlu0 %1395, %v1430_v28  }
 0x2da   :  { %683 = vperm.xlu0 %1395, %v1432_v29  }
 0x2de   :  { %686 = vperm.xlu0 %1395, %v1434_v30  }
 0x2e2   :  { %689 = vperm.xlu0 %1395, %v1436_v13  }
 0x345   :  { %v669_v3 = vpop.permute.xlu0 %668 }
 0x346   :  { %v694_v38 = vrot.slane %v669_v3, %v1680_v19 }
 0x349   :  { %v672_v7 = vpop.permute.xlu0 %671 }
 0x34a   :  { %v698_v36 = vrot.slane %v672_v7, %v1680_v19 }
 0x34c   :  { %v723_v46 = vsel %vm575_vm2, %v698_v36, %v694_v38 }
 0x34d   :  { %v675_v31 = vpop.permute.xlu0 %674 }
 0x34e   :  { %v702_v37 = vrot.slane %v675_v31, %v1680_v19 }
 0x350   :  { %v724_v48 = vsel %vm577_vm3, %v702_v37, %v723_v46 }
 0x351   :  { %v678_v32 = vpop.permute.xlu0 %677 }
 0x352   :  { %v706_v41 = vrot.slane %v678_v32, %v1680_v19 }
 0x354   :  { %v725_v50 = vsel %vm579_vm4, %v706_v41, %v724_v48 }
 0x355   :  { %v681_v9 = vpop.permute.xlu0 %680 }
 0x356   :  { %v710_v44 = vrot.slane %v681_v9, %v1680_v19 }
 0x358   :  { %v726_v52 = vsel %vm581_vm5, %v710_v44, %v725_v50 }
 0x359   :  { %v684_v33 = vpop.permute.xlu0 %683 }
 0x35a   :  { %v714_v47 = vrot.slane %v684_v33, %v1680_v19 }
 0x35c   :  { %v727_v54 = vsel %vm583_vm6, %v714_v47, %v726_v52 }
 0x35d   :  { %v687_v45 = vpop.permute.xlu0 %686 }
 0x35e   :  { %v718_v49 = vrot.slane %v687_v45, %v1680_v19 }
 0x360   :  { %v728_v16 = vsel %vm585_vm7, %v718_v49, %v727_v54 }
 0x361   :  { %v690_v53 = vpop.permute.xlu0 %689 }
 0x362   :  { %v722_v55 = vrot.slane %v690_v53, %v1680_v19 }
 0x364   :  { %v729_v58 = vsel %vm587_vm8, %v722_v55, %v728_v16 }
 0x365   :  { %v731_v59 = vsel %vm590_vm9, %v729_v58, 0.0 }
 0x366   :  { %732 = vadd.xlane.f32.xlu0 %v731_v59 }
 0x3f3   :  { %v733_v0 = vpop.xlane.xlu0 %732 }
 0x3f4   :  { %1437 = vrcp.f32 %v733_v0 }
 0x3fe   :  { %v1438_v1 = vpop.eup %1437 }
 0x3ff   :  { %v755_v4 = vrot.slane %v1438_v1, %v1621_v27  ;;  %v739_v5 = vrot.slane %v1438_v1, %v1573_v14  ;;  %v743_v8 = vrot.slane %v1438_v1, %v1563_v10  ;;  %v747_v61 = vrot.slane %v1438_v1, %v1566_v11 }
 0x400   :  { %v751_v57 = vrot.slane %v1438_v1, %v1569_v12  ;;  %v759_v27 = vrot.slane %v1438_v1, %v1596_v22  ;;  %v763_v2 = vrot.slane %v1438_v1, %v1654_v35  ;;  %v767_v10 = vrot.slane %v1438_v1, %v1651_v34  ;;  %v1407_v12 = vld [vmem:[%s1848_s6] sm:$0xff]   ;;  %v1408_v22 = vld [vmem:[%s1848_s6 + $0x8] sm:$0xff]  }
 0x401   :  { %v780_v6 = vmul.f32 %v1430_v28, %v755_v4  ;;  %v776_v19 = vmul.f32 %v1707_v51, %v739_v5  ;;  %v777_v56 = vmul.f32 %v1424_v18, %v743_v8  ;;  %v778_v15 = vmul.f32 %v1426_v21, %v747_v61  ;;  %v1742_v18 = vpop.f32.mrb[2].mxu1  ;;  %1343 = vmatpush3.bf16.msra.mxu1 %v1407_v12  ;;  %v1409_v34 = vld [vmem:[%s1849_s7] sm:$0xff]  }
 0x402   :  { %v779_v20 = vmul.f32 %v1428_v25, %v751_v57  ;;  %v781_v14 = vmul.f32 %v1432_v29, %v759_v27  ;;  %v782_v51 = vmul.f32 %v1434_v30, %v763_v2  ;;  %v783_v11 = vmul.f32 %v1436_v13, %v767_v10  ;;  %v233_v23 = vpop.f32.mrb[3].mxu1  ;;  %1344 = vmatprep.subr.bf16.mxu1 %v1467_v17 }
 0x403   :  { %806 = vperm.xlu0 %1395, %v780_v6   ;;  %786 = vperm.xlu1 %1396, %v776_v19  }
 0x404   :  { %1351 = vmatpush3.bf16.msra.mxu0 %v1409_v34 }
 0x405   :  { %1345 = vmatpush3.bf16.msra.mxu1 %v1408_v22  ;;  %1352 = vmatprep.subr.bf16.mxu0 %v1467_v17 }
 0x406   :  { %1358 = vmatprep.subr.bf16.mxu1 %v1467_v17 }
 0x407   :  { %791 = vperm.xlu1 %1396, %v777_v56  }
 0x40b   :  { %796 = vperm.xlu1 %1396, %v778_v15  }
 0x40f   :  { %801 = vperm.xlu1 %1396, %v779_v20  }
 0x413   :  { %811 = vperm.xlu1 %1396, %v781_v14  }
 0x417   :  { %816 = vperm.xlu1 %1396, %v782_v51  }
 0x41b   :  { %821 = vperm.xlu1 %1396, %v783_v11  }
 0x482   :  { %v807_v35 = vpop.permute.xlu0 %806  ;;  %v787_v21 = vpop.permute.xlu1 %786 }
 0x483   :  { %v828_v24 = vmul.f32 %v807_v35, %v230_v62  ;;  %v824_v25 = vmul.f32 %v787_v21, %v1627_v40 }
 0x485   :  { %v860_v63 = vsel %vm86_vm0, %v828_v24, 0.0  ;;  %v832_v28 = vsel %vm86_vm0, %v824_v25, 0.0 }
 0x486   :  { %v861_v29 = vrot.slane %v860_v63, 4  ;;  %v833_v30 = vrot.slane %v832_v28, 4  ;;  %v792_v13 = vpop.permute.xlu1 %791 }
 0x487   :  { %v825_v3 = vmul.f32 %v792_v13, %v1631_v43 }
 0x488   :  { %v834_v7 = vadd.f32 %v833_v30, %v832_v28  ;;  %v862_v31 = vadd.f32 %v861_v29, %v860_v63 }
 0x489   :  { %v839_v32 = vsel %vm86_vm0, %v825_v3, 0.0 }
 0x48a   :  { %v835_v9 = vrot.slane %v834_v7, 2  ;;  %v840_v33 = vrot.slane %v839_v32, 4  ;;  %v797_v36 = vpop.permute.xlu1 %796  ;;  %v863_v41 = vrot.slane %v862_v31, 2 }
 0x48b   :  { %v826_v37 = vmul.f32 %v1625_v39, %v797_v36 }
 0x48c   :  { %v836_v38 = vadd.f32 %v835_v9, %v834_v7  ;;  %v841_v40 = vadd.f32 %v840_v33, %v839_v32  ;;  %v864_v53 = vadd.f32 %v863_v41, %v862_v31 }
 0x48d   :  { %v846_v44 = vsel %vm86_vm0, %v826_v37, 0.0 }
 0x48e   :  { %v837_v45 = vrot.slane %v836_v38, 1  ;;  %v842_v46 = vrot.slane %v841_v40, 2  ;;  %v847_v47 = vrot.slane %v846_v44, 4  ;;  %v802_v48 = vpop.permute.xlu1 %801  ;;  %v865_v4 = vrot.slane %v864_v53, 1 }
 0x48f   :  { %v827_v43 = vmul.f32 %v1629_v42, %v802_v48 }
 0x490   :  { %v838_v49 = vadd.f32 %v837_v45, %v836_v38  ;;  %v843_v50 = vadd.f32 %v842_v46, %v841_v40  ;;  %v848_v52 = vadd.f32 %v847_v47, %v846_v44  ;;  %v866_v2 = vadd.f32 %v865_v4, %v864_v53  ;;  %v1415_v4 = vld [vmem:[%s1850_s8 + $0x20] sm:$0xff]  }
 0x491   :  { %v853_v54 = vsel %vm86_vm0, %v827_v43, 0.0 }
 0x492   :  { %v844_v55 = vrot.slane %v843_v50, 1  ;;  %v849_v16 = vrot.slane %v848_v52, 2  ;;  %v812_v39 = vpop.permute.xlu1 %811  ;;  %v854_v58 = vrot.slane %v853_v54, 4  ;;  %v888_v62 = vpack.c.bf16 %v838_v49, %v838_v49 }
 0x493   :  { %v829_v59 = vmul.f32 %v812_v39, %v233_v23  ;;  %v892_v63 = vpack.c.bf16 %v866_v2, %v866_v2 }
 0x494   :  { %v845_v0 = vadd.f32 %v844_v55, %v843_v50  ;;  %v850_v1 = vadd.f32 %v849_v16, %v848_v52  ;;  %v855_v5 = vadd.f32 %v854_v58, %v853_v54  ;;  %v908_v57 = vunpack.c.l.b16 %v888_v62  ;;  %v1410_v58 = vld [vmem:[%s1849_s7 + $0x8] sm:$0xff]  }
 0x495   :  { %v867_v6 = vsel %vm86_vm0, %v829_v59, 0.0  ;;  %v912_v37 = vunpack.c.l.b16 %v892_v63  ;;  %1353 = vmatpush3.bf16.msra.mxu0 %v1410_v58  ;;  %v1411_v59 = vld [vmem:[%s1850_s8] sm:$0xff]   ;;  %v1412_v62 = vld [vmem:[%s1850_s8 + $0x8] sm:$0xff]  }
 0x496   :  { %v889_v19 = vpack.c.bf16 %v845_v0, %v845_v0  ;;  %v851_v42 = vrot.slane %v850_v1, 1  ;;  %v868_v8 = vrot.slane %v867_v6, 4  ;;  %v817_v56 = vpop.permute.xlu1 %816  ;;  %v856_v61 = vrot.slane %v855_v5, 2  ;;  %1378 = vmatprep.subr.bf16.mxu0 %v1467_v17  ;;  %v1413_v0 = vld [vmem:[%s1850_s8 + $0x10] sm:$0xff]  }
 0x497   :  { %v830_v15 = vmul.f32 %v1731_v60, %v817_v56 }
 0x498   :  { %v909_v20 = vunpack.c.l.b16 %v889_v19  ;;  %v852_v27 = vadd.f32 %v851_v42, %v850_v1  ;;  %v869_v14 = vadd.f32 %v868_v8, %v867_v6  ;;  %v857_v51 = vadd.f32 %v856_v61, %v855_v5  ;;  %v1414_v1 = vld [vmem:[%s1850_s8 + $0x18] sm:$0xff]   ;;  %v1416_v5 = vld [vmem:[%s1850_s8 + $0x28] sm:$0xff]   ;;  %v1417_v6 = vld [vmem:[%s1850_s8 + $0x30] sm:$0xff]  }
 0x499   :  { %v874_v10 = vsel %vm86_vm0, %v830_v15, 0.0  ;;  %v979_v19 = vunpack.c.l.bf16 %v1613_v26  ;;  %v1419_v26 = vld [vmem:[%s1851_s9] sm:$0xff]  }
 0x49a   :  { %v916_v11 = vsel %vm575_vm2, %v909_v20, %v908_v57  ;;  %v890_v23 = vpack.c.bf16 %v852_v27, %v852_v27  ;;  %v870_v12 = vrot.slane %v869_v14, 2  ;;  %v875_v22 = vrot.slane %v874_v10, 4  ;;  %v822_v34 = vpop.permute.xlu1 %821  ;;  %v1418_v20 = vld [vmem:[%s1850_s8 + $0x38] sm:$0xff]  }
 0x49b   :  { %v858_v35 = vrot.slane %v857_v51, 1  ;;  %v831_v21 = vmul.f32 %v1742_v18, %v822_v34 }
 0x49c   :  { %v910_v24 = vunpack.c.l.b16 %v890_v23  ;;  %v871_v25 = vadd.f32 %v870_v12, %v869_v14  ;;  %v876_v60 = vadd.f32 %v875_v22, %v874_v10  ;;  %v1420_v23 = vld [vmem:[%s1851_s9 + $0x8] sm:$0xff]   ;;  %s1471_s9 = smov [#allocation2]  }
 0x49d   :  { %v859_v28 = vadd.f32 %v858_v35, %v857_v51  ;;  %v881_v29 = vsel %vm86_vm0, %v831_v21, 0.0  ;;  %s1231_s18 = sshll.u32 %s1471_s9, 4  ;;  %s1232_s18 = int_to_ptr.vmem [resolvable:$true] %s1231_s18 }
 0x49e   :  { %v917_v30 = vsel %vm577_vm3, %v910_v24, %v916_v11  ;;  %v872_v13 = vrot.slane %v871_v25, 1  ;;  %v877_v3 = vrot.slane %v876_v60, 2  ;;  %v882_v7 = vrot.slane %v881_v29, 4  ;;  %p1448_p1 = scmp.lt.s32.totalorder %s1232_s18, %s1232_s18 }
 0x49f   :  { %v891_v31 = vpack.c.bf16 %v859_v28, %v859_v28 }
 0x4a0   :  { %v873_v32 = vadd.f32 %v872_v13, %v871_v25  ;;  %v878_v9 = vadd.f32 %v877_v3, %v876_v60  ;;  %v883_v33 = vadd.f32 %v882_v7, %v881_v29 }
 0x4a1   :  { %v911_v36 = vunpack.c.l.b16 %v891_v31 }
 0x4a2   :  { %v893_v38 = vpack.c.bf16 %v873_v32, %v873_v32  ;;  %v879_v18 = vrot.slane %v878_v9, 1  ;;  %v884_v40 = vrot.slane %v883_v33, 2 }
 0x4a3   :  { %v918_v41 = vsel %vm579_vm4, %v911_v36, %v917_v30 }
 0x4a4   :  { %v919_v44 = vsel %vm581_vm5, %v912_v37, %v918_v41  ;;  %v913_v45 = vunpack.c.l.b16 %v893_v38  ;;  %v880_v46 = vadd.f32 %v879_v18, %v878_v9  ;;  %v885_v47 = vadd.f32 %v884_v40, %v883_v33 }
 0x4a6   :  { %v920_v48 = vsel %vm583_vm6, %v913_v45, %v919_v44  ;;  %v894_v43 = vpack.c.bf16 %v880_v46, %v880_v46  ;;  %v886_v49 = vrot.slane %v885_v47, 1 }
 0x4a8   :  { %v914_v50 = vunpack.c.l.b16 %v894_v43  ;;  %v887_v52 = vadd.f32 %v886_v49, %v885_v47 }
 0x4aa   :  { %v921_v53 = vsel %vm585_vm7, %v914_v50, %v920_v48  ;;  %v895_v54 = vpack.c.bf16 %v887_v52, %v887_v52 }
 0x4ac   :  { %v915_v55 = vunpack.c.l.b16 %v895_v54 }
 0x4ae   :  { %v922_v16 = vsel %vm587_vm8, %v915_v55, %v921_v53 }
 0x4af   :  { %v923_v39 = vpack.c.b16 %v922_v16, %v922_v16 }
 0x4b1   :  { %1347 = vmatmul.mubr.msk.bf16.vlgmr.msra.gmra.mrb[4].mxu1 %vm86_vm0, %v923_v39 }
 0x4b2   :  { %1374 = vmatprep.mubr.msk.bf16.mxu1 %vm1468_vm1, %v1467_v17  ;;  %1359 = vmatpush3.bf16.msra.mxu1 %v1411_v59 }
 0x4b3   :  { %1360 = vmatprep.subr.bf16.mxu1 %v1467_v17 }
 0x4b6   :  { %1361 = vmatpush3.bf16.msra.mxu1 %v1412_v62 }
 0x4b7   :  { %1362 = vmatprep.subr.bf16.mxu1 %v1467_v17 }
 0x4ba   :  { %1363 = vmatpush3.bf16.msra.mxu1 %v1413_v0 }
 0x4bb   :  { %1364 = vmatprep.subr.bf16.mxu1 %v1467_v17 }
 0x4be   :  { %1365 = vmatpush3.bf16.msra.mxu1 %v1414_v1 }
 0x4bf   :  { %1366 = vmatprep.subr.bf16.mxu1 %v1467_v17 }
 0x4c2   :  { %1367 = vmatpush3.bf16.msra.mxu1 %v1415_v4 }
 0x4c3   :  { %1368 = vmatprep.subr.bf16.mxu1 %v1467_v17 }
 0x4c6   :  { %1369 = vmatpush3.bf16.msra.mxu1 %v1416_v5 }
 0x4c7   :  { %1370 = vmatprep.subr.bf16.mxu1 %v1467_v17 }
 0x4ca   :  { %1371 = vmatpush3.bf16.msra.mxu1 %v1417_v6 }
 0x4cb   :  { %1372 = vmatprep.subr.bf16.mxu1 %v1467_v17 }
 0x4ce   :  { %1373 = vmatpush3.bf16.msra.mxu1 %v1418_v20 }
 0x584   :  { %v973_v42 = vpop.f32.mrb[4].mxu1 }
 0x585   :  { %v980_v8 = vadd.f32 %v979_v19, %v973_v42  ;;  %v1348_v56 = vpop.f32.mrb[5].mxu1 }
 0x586   :  { %v976_v61 = vpop.f32.mrb[6].mxu1 }
 0x587   :  { %v981_v15 = vpack.c.bf16 %v980_v8, %v980_v8  ;;  %v1349_v57 = vpop.f32.mrb[7].mxu1 }
 0x589   :  { %1355 = vmatmul.mubr.msk.bf16.vlgmr.msra.gmra.mrb[16].mxu0 %vm86_vm0, %v981_v15 }
 0x58a   :  { %1382 = vmatprep.mubr.msk.bf16.mxu0 %vm1468_vm1, %v1467_v17  ;;  %1379 = vmatpush3.bf16.msra.mxu0 %v1419_v26 }
 0x58b   :  { %1380 = vmatprep.subr.bf16.mxu0 %v1467_v17  ;;  %v1273_v17 = vld [vmem:[%s1852_s10] ss:$0 sm:$0xff]  ;;  %s1443_s10 = scalar_lea.vmem %s1232_s18, 128 }
 0x58c   :  { %p1444_p0 = scmp.ne.s32.totalorder %s1232_s18, %s1443_s10  ;;  %p1449_p2 = scmp.lt.s32.totalorder %s1443_s10, %s1443_s10 }
 0x58e   :  { %1381 = vmatpush3.bf16.msra.mxu0 %v1420_v23  ;;  %p1450_p3 = por %p1449_p2, %p1448_p1 }
 0x590   :  { %p1451_p4 = pnand %p1450_p3, %p1444_p0 }
 0x65c   :  { %v1035_v27 = vpop.f32.mrb[16].mxu0 }
 0x65d   :  { %v1041_v14 = vmax.f32 %v1035_v27, 0.0  ;;  %v1356_v2 = vpop.f32.mrb[17].mxu0 }
 0x65e   :  { %v1038_v51 = vpop.f32.mrb[18].mxu0 }
 0x65f   :  { %v1042_v10 = vpack.c.bf16 %v1041_v14, %v1041_v14  ;;  %v1357_v11 = vpop.f32.mrb[19].mxu0 }
 0x661   :  { %1375 = vmatmul.mubr.bf16.vlgmr.msra.gmra.mrb[8].mxu1 %v1042_v10 }
 0x734   :  { %v1141_v12 = vpop.f32.mrb[8].mxu1 }
 0x735   :  { %v1147_v22 = vadd.f32 %v1141_v12, %v980_v8  ;;  %v1376_v34 = vpop.f32.mrb[9].mxu1 }
 0x736   :  { %v1144_v35 = vpop.f32.mrb[10].mxu1 }
 0x737   :  { %v1148_v21 = vpack.c.bf16 %v1147_v22, %v1147_v22  ;;  %v1377_v24 = vpop.f32.mrb[11].mxu1 }
 0x739   :  { %1383 = vmatmul.mubr.msk.bf16.vlgmr.msra.gmra.mrb[20].mxu0 %vm86_vm0, %v1148_v21 }
 0x80c   :  { %v1209_v25 = vpop.f32.mrb[20].mxu0 }
 0x80d   :  { %v1210_v60 = vadd.f32 %v1273_v17, %v1209_v25  ;;  %v1384_v63 = vpop.f32.mrb[21].mxu0 }
 0x80e   :  { %v1212_v28 = vpop.f32.mrb[22].mxu0 }
 0x80f   :  { %1215 = vmax.xlane.f32.xlu1 %v1210_v60  ;;  %v1385_v29 = vpop.f32.mrb[23].mxu0 }
 0x89c   :  { %v1216_v30 = vpop.xlane.xlu1 %1215 }
 0x89d   :  { %v1217_v13 = vsub.f32 %v1210_v60, %v1216_v30 }
 0x89f   :  { %v1218_v3 = vmul.f32 1.442695, %v1217_v13 }
 0x8a1   :  { %1439 = vpow2.f32 %v1218_v3 }
 0x8ab   :  { %v1440_v7 = vpop.eup %1439 }
 0x8ac   :  { %1220 = vadd.xlane.f32.xlu0 %v1440_v7 }
 0x939   :  { %v1221_v31 = vpop.xlane.xlu0 %1220 }
 0x93a   :  { %1441 = vrcp.f32 %v1221_v31 }
 0x944   :  { %v1442_v32 = vpop.eup %1441 }
 0x945   :  { %v1223_v9 = vmul.f32 %v1442_v32, %v1440_v7 }
 0x947   :  { %1224 = vst [vmem:[#allocation2] sm:$0xff] %v1223_v9 }
 0x948   :  { %1454 = shalt.err (!%p1451_p4)
}
 0x949   :  { %s1455_s21 = scalar_lea.hbm %s1853_s11, 128 }
 0x94a   :  { %p1456_p5 = scmp.ne.s32.totalorder %s1853_s11, %s1455_s21  ;;  %p1459_p6 = scmp.lt.u32.totalorder %s1455_s21, %s1853_s11 }
 0x94c   :  { %p1461_p7 = pnand %p1459_p6, %p1456_p5 }
 0x94e   :  { %1464 = shalt.err (!%p1461_p7)
}
 0x94f   :  { %1234 = dma.vmem_to_hbm [thread:$0]  %s1232_s18, 128, %s1853_s11, [#allocation3]  }
 0x950   :  { %1465 = dma.done.wait [#allocation3], 128  }
 0x951   :  { %1466 = vsyncadd [#allocation3], 4294967168 }
 0x952   :  { %1238 = vsyncpa [#allocation3], 1 }

</bundles_post_ra>
